<compile_context>
chip_gen: v7x
topology: tpu7x:2x2x1
jax: 0.10.0
libtpu: 0.0.40
codegen_flags: <defaults>
</compile_context>

<pallas_src>
import functools

import jax
import jax.numpy as jnp
from jax.experimental import pallas as pl
from jax.experimental.pallas import tpu as pltpu


def _round_up(x, m):
    return ((x + m - 1) // m) * m


def _reward_kernel(x_ref, w1_ref, b1_ref, w2_ref, b2_ref, w3t_ref, b3_ref,
                   o_ref, xpad_ref, *, d_in):
    bf16 = jnp.bfloat16
    d_in_p = xpad_ref.shape[1]

    # Stage x: zero-pad the (tb, d_in) bf16 tile to lane width inside VMEM so the
    # first MXU contraction is fully aligned and padded lanes are exactly zero.
    if d_in == d_in_p:
        x = x_ref[...]
    else:
        xpad_ref[...] = jnp.zeros_like(xpad_ref)
        xpad_ref[:, :d_in] = x_ref[...]
        x = xpad_ref[...]

    # fc1 + relu: bf16 operands on the MXU, f32 accumulate / elementwise (v5e-safe).
    h1 = jnp.dot(x, w1_ref[...], preferred_element_type=jnp.float32)
    h1 = jnp.maximum(h1 + b1_ref[...], 0.0)

    # fc2 + relu
    h2 = jnp.dot(h1.astype(bf16), w2_ref[...], preferred_element_type=jnp.float32)
    h2 = jnp.maximum(h2 + b2_ref[...], 0.0)

    # fc3 computed transposed: (16, hid) x (tb, hid) -> (16, tb). Only row 0 is the
    # real output neuron, so the store is a lane-dense (1, tb) tile (no 128x-wide
    # writeback). Sigmoid stays f32 on the EUP.
    logits_t = jax.lax.dot_general(
        w3t_ref[...], h2.astype(bf16),
        dimension_numbers=(((1,), (1,)), ((), ())),
        preferred_element_type=jnp.float32)
    o_ref[...] = jax.nn.sigmoid(logits_t[0:1, :] + b3_ref[...]).astype(o_ref.dtype)


def prepare_params(w1, b1, w2, b2, w3, b3):
    """One-time weight padding / bf16 cast (hoisted off the per-forward call path).

    w1/w2 stored [in, out]; w3 stored transposed [out(padded to 16), in].
    Biases stay f32 (elementwise math is f32 in the kernel).
    """
    d_in, d_hid = w1.shape
    d_in_p = _round_up(d_in, 128)
    d_hid_p = _round_up(d_hid, 128)
    bf16, f32 = jnp.bfloat16, jnp.float32

    w1p = jnp.zeros((d_in_p, d_hid_p), bf16).at[:d_in, :d_hid].set(w1.astype(bf16))
    b1p = jnp.zeros((1, d_hid_p), f32).at[:, :d_hid].set(b1.astype(f32))
    w2p = jnp.zeros((d_hid_p, d_hid_p), bf16).at[:d_hid, :d_hid].set(w2.astype(bf16))
    b2p = jnp.zeros((1, d_hid_p), f32).at[:, :d_hid].set(b2.astype(f32))
    w3tp = jnp.zeros((16, d_hid_p), bf16).at[:1, :d_hid].set(w3.astype(bf16).T)
    b3p = jnp.asarray(b3, f32).reshape(1, 1)
    return (w1p, b1p, w2p, b2p, w3tp, b3p)


def reward_model_forward(x, params, *, max_batch_tile=512):
    """x: [B, state_dim + action_dim]; params from prepare_params().

    Returns sigmoid(fc3(relu(fc2(relu(fc1(x)))))) with shape [B, 1], float32.
    """
    w1p, b1p, w2p, b2p, w3tp, b3p = params
    B, d_in = x.shape
    d_in_p, d_hid_p = w1p.shape
    assert d_in_p == _round_up(d_in, 128), "params were prepared for a different d_in"

    # --- batch tiling --------------------------------------------------------
    # tb multiple of 16 (bf16 sublane packing). For B > 128 use >= 2 grid steps so
    # v7x's two TensorCores both get work, and a multiple of 128 so the (1, tb)
    # output block stays lane-aligned.
    if B <= 128:
        tb = _round_up(B, 16)
        b_p = tb
    else:
        tb = min(_round_up(max_batch_tile, 128), _round_up(pl.cdiv(B, 2), 128))
        b_p = _round_up(B, tb)
    grid = (b_p // tb,)

    # Per-call work on x only: cast to bf16 (MXU operand) + pad batch to the tile.
    xb = x.astype(jnp.bfloat16)
    if b_p != B:
        xb = jnp.pad(xb, ((0, b_p - B), (0, 0)))

    # --- explicit VMEM budget (weights are single-buffered residents) --------
    param_bytes = sum(int(p.size) * p.dtype.itemsize for p in params)
    est = (param_bytes
           + 2 * tb * d_in * 2        # double-buffered x tiles (bf16)
           + tb * d_in_p * 2          # in-VMEM padded x scratch
           + 2 * tb * 4               # double-buffered (1, tb) f32 output tiles
           + 3 * tb * d_hid_p * 4     # h1 / h2 / fc3 f32 temporaries
           + (4 << 20))               # compiler scratch slack
    try:
        cap = int(pltpu.get_tpu_info().vmem_capacity_bytes)
    except Exception:
        cap = 64 << 20                # conservative default: v7x per-TensorCore VMEM
    vmem_limit = int(min(max(est, 32 << 20), cap * 7 // 8))

    const = lambda i: (0, 0)
    # Constant-index residents: single buffer (default double-buffering would just
    # double weight VMEM for blocks that never change).
    resident = lambda shape: pl.BlockSpec(shape, const, pipeline_mode=pl.Buffered(1))
    # TODO(synk): for hidden >= ~2048-3072 on v7x (64 MiB VMEM), K-tile w2 over an
    # extra "arbitrary" grid axis with an f32 VMEM accumulator instead of keeping
    # the whole padded w2 resident, even in bf16.

    out = pl.pallas_call(
        functools.partial(_reward_kernel, d_in=d_in),
        out_shape=jax.ShapeDtypeStruct((1, b_p), jnp.float32),
        grid=grid,
        in_specs=[
            pl.BlockSpec((tb, d_in), lambda i: (i, 0)),   # x tile (pipelined, unpadded)
            resident(w1p.shape),                          # w1   (VMEM-resident)
            resident(b1p.shape),                          # b1
            resident(w2p.shape),                          # w2
            resident(b2p.shape),                          # b2
            resident(w3tp.shape),                         # w3^T
            resident(b3p.shape),                          # b3
        ],
        out_specs=pl.BlockSpec((1, tb), lambda i: (0, i)),
        scratch_shapes=[pltpu.VMEM((tb, d_in_p), jnp.bfloat16)],
        compiler_params=pltpu.CompilerParams(
            dimension_semantics=("parallel",),
            vmem_limit_bytes=vmem_limit,
        ),
    )(xb, w1p, b1p, w2p, b2p, w3tp, b3p)

    # (1, b_p) row-major is the same data order as (b_p, 1); drop batch padding.
    return out.reshape(b_p, 1)[:B]


def init_params(key, state_dim, action_dim, hidden_dim):
    """Deterministic init matching nn.Linear shapes (stored as [in, out])."""
    in_dim = state_dim + action_dim
    ks = jax.random.split(key, 6)

    def linear(kw, kb, fan_in, fan_out):
        bound = 1.0 / jnp.sqrt(jnp.float32(fan_in))
        w = jax.random.uniform(kw, (fan_in, fan_out), jnp.float32, -bound, bound)
        b = jax.random.uniform(kb, (1, fan_out), jnp.float32, -bound, bound)
        return w, b

    w1, b1 = linear(ks[0], ks[1], in_dim, hidden_dim)
    w2, b2 = linear(ks[2], ks[3], hidden_dim, hidden_dim)
    w3, b3 = linear(ks[4], ks[5], hidden_dim, 1)
    return w1, b1, w2, b2, w3, b3


def reference_forward(x, w1, b1, w2, b2, w3, b3):
    h1 = jnp.maximum(x @ w1 + b1, 0.0)
    h2 = jnp.maximum(h1 @ w2 + b2, 0.0)
    return jax.nn.sigmoid(h2 @ w3 + b3)


if __name__ == "__main__":
    batch = 8
    state_dim = 16
    action_dim = 4
    hidden_dim = 32

    key = jax.random.PRNGKey(0)
    k_params, k_x = jax.random.split(key)
    w1, b1, w2, b2, w3, b3 = init_params(k_params, state_dim, action_dim, hidden_dim)
    params = prepare_params(w1, b1, w2, b2, w3, b3)   # one-time, off the call path
    # RewardModel consumes a concatenated (state, action) vector.
    x = jax.random.normal(k_x, (batch, state_dim + action_dim), jnp.float32)

    out = jax.block_until_ready(reward_model_forward(x, params))

    ref = reference_forward(x, w1, b1, w2, b2, w3, b3)
    assert out.shape == (batch, 1)
    assert bool(jnp.all(jnp.isfinite(out)))
    # bf16 MXU operands -> relaxed tolerance vs the f32 reference.
    assert jnp.allclose(out, ref, atol=2e-2, rtol=2e-2)

    print("KERNEL_OK")
</pallas_src>

<mosaic_0001>
module attributes {stable_mosaic.version = 11 : i64} {
  func.func @_reward_kernel(%arg0: i32, %arg1: memref<16x20xbf16, #tpu.memory_space<vmem>>, %arg2: memref<128x128xbf16, #tpu.memory_space<vmem>>, %arg3: memref<1x128xf32, #tpu.memory_space<vmem>>, %arg4: memref<128x128xbf16, #tpu.memory_space<vmem>>, %arg5: memref<1x128xf32, #tpu.memory_space<vmem>>, %arg6: memref<16x128xbf16, #tpu.memory_space<vmem>>, %arg7: memref<1x1xf32, #tpu.memory_space<vmem>>, %arg8: memref<1x16xf32, #tpu.memory_space<vmem>>, %arg9: memref<16x128xbf16, #tpu.memory_space<vmem>>) attributes {dimension_semantics = [#tpu.dimension_semantics<parallel>], iteration_bounds = array<i64: 1>, scalar_prefetch = 0 : i64, scratch_operands = 1 : i64, tpu.core_type = #tpu.core_type<tc>, window_params = [{transform_indices = @transform_0, window_bounds = array<i64: 16, 20>}, {pipeline_mode = #tpu.pipeline_mode<synchronous>, transform_indices = @transform_1, window_bounds = array<i64: 128, 128>}, {pipeline_mode = #tpu.pipeline_mode<synchronous>, transform_indices = @transform_2, window_bounds = array<i64: 1, 128>}, {pipeline_mode = #tpu.pipeline_mode<synchronous>, transform_indices = @transform_3, window_bounds = array<i64: 128, 128>}, {pipeline_mode = #tpu.pipeline_mode<synchronous>, transform_indices = @transform_4, window_bounds = array<i64: 1, 128>}, {pipeline_mode = #tpu.pipeline_mode<synchronous>, transform_indices = @transform_5, window_bounds = array<i64: 16, 128>}, {pipeline_mode = #tpu.pipeline_mode<synchronous>, transform_indices = @transform_6, window_bounds = array<i64: 1, 1>}, {transform_indices = @transform_7, window_bounds = array<i64: 1, 16>}]} {
    %cst = arith.constant 0.000000e+00 : bf16
    %0 = vector.broadcast %cst : bf16 to vector<16x128xbf16>
    %c0 = arith.constant 0 : index
    %c0_0 = arith.constant 0 : index
    %1 = vector.load %arg9[%c0, %c0_0] : memref<16x128xbf16, #tpu.memory_space<vmem>>, vector<16x128xbf16>
    tpu.vector_store %arg9[%c0, %c0_0], %0 {strides = array<i32>} : memref<16x128xbf16, #tpu.memory_space<vmem>>, vector<16x128xbf16>,
    %c0_1 = arith.constant 0 : index
    %c0_2 = arith.constant 0 : index
    %2 = vector.load %arg1[%c0_1, %c0_2] : memref<16x20xbf16, #tpu.memory_space<vmem>>, vector<16x20xbf16>
    %c0_3 = arith.constant 0 : index
    %c0_4 = arith.constant 0 : index
    %3 = vector.load %arg9[%c0_3, %c0_4] : memref<16x128xbf16, #tpu.memory_space<vmem>>, vector<16x20xbf16>
    tpu.vector_store %arg9[%c0_3, %c0_4], %2 {strides = array<i32>} : memref<16x128xbf16, #tpu.memory_space<vmem>>, vector<16x20xbf16>,
    %c0_5 = arith.constant 0 : index
    %c0_6 = arith.constant 0 : index
    %4 = vector.load %arg9[%c0_5, %c0_6] : memref<16x128xbf16, #tpu.memory_space<vmem>>, vector<16x128xbf16>
    %c0_7 = arith.constant 0 : index
    %c0_8 = arith.constant 0 : index
    %5 = vector.load %arg2[%c0_7, %c0_8] : memref<128x128xbf16, #tpu.memory_space<vmem>>, vector<128x128xbf16>
    %cst_9 = arith.constant dense<0.000000e+00> : vector<16x128xf32>
    %6 = tpu.matmul %4, %5, %cst_9 {dimension_numbers = #tpu.dot_dimension_numbers<[1], [0], [0], [1], [0, 0, 1, 1], [], []>} : vector<16x128xbf16>, vector<128x128xbf16>, vector<16x128xf32> -> vector<16x128xf32>
    %c0_10 = arith.constant 0 : index
    %c0_11 = arith.constant 0 : index
    %7 = vector.load %arg3[%c0_10, %c0_11] : memref<1x128xf32, #tpu.memory_space<vmem>>, vector<1x128xf32>
    %8 = vector.broadcast %7 : vector<1x128xf32> to vector<16x128xf32>
    %9 = arith.addf %6, %8 : vector<16x128xf32>
    %cst_12 = arith.constant 0.000000e+00 : f32
    %10 = vector.broadcast %cst_12 : f32 to vector<16x128xf32>
    %11 = arith.maximumf %9, %10 : vector<16x128xf32>
    %12 = arith.truncf %11 : vector<16x128xf32> to vector<16x128xbf16>
    %c0_13 = arith.constant 0 : index
    %c0_14 = arith.constant 0 : index
    %13 = vector.load %arg4[%c0_13, %c0_14] : memref<128x128xbf16, #tpu.memory_space<vmem>>, vector<128x128xbf16>
    %cst_15 = arith.constant dense<0.000000e+00> : vector<16x128xf32>
    %14 = tpu.matmul %12, %13, %cst_15 {dimension_numbers = #tpu.dot_dimension_numbers<[1], [0], [0], [1], [0, 0, 1, 1], [], []>} : vector<16x128xbf16>, vector<128x128xbf16>, vector<16x128xf32> -> vector<16x128xf32>
    %c0_16 = arith.constant 0 : index
    %c0_17 = arith.constant 0 : index
    %15 = vector.load %arg5[%c0_16, %c0_17] : memref<1x128xf32, #tpu.memory_space<vmem>>, vector<1x128xf32>
    %16 = vector.broadcast %15 : vector<1x128xf32> to vector<16x128xf32>
    %17 = arith.addf %14, %16 : vector<16x128xf32>
    %cst_18 = arith.constant 0.000000e+00 : f32
    %18 = vector.broadcast %cst_18 : f32 to vector<16x128xf32>
    %19 = arith.maximumf %17, %18 : vector<16x128xf32>
    %c0_19 = arith.constant 0 : index
    %c0_20 = arith.constant 0 : index
    %20 = vector.load %arg6[%c0_19, %c0_20] : memref<16x128xbf16, #tpu.memory_space<vmem>>, vector<16x128xbf16>
    %21 = arith.truncf %19 : vector<16x128xf32> to vector<16x128xbf16>
    %cst_21 = arith.constant dense<0.000000e+00> : vector<16x16xf32>
    %22 = tpu.matmul %20, %21, %cst_21 {dimension_numbers = #tpu.dot_dimension_numbers<[1], [1], [0], [0], [0, 0, 1, 0], [], []>} : vector<16x128xbf16>, vector<16x128xbf16>, vector<16x16xf32> -> vector<16x16xf32>
    %23 = vector.extract_strided_slice %22 {offsets = [0, 0], sizes = [1, 16], strides = [1, 1]} : vector<16x16xf32> to vector<1x16xf32>
    %c0_22 = arith.constant 0 : index
    %c0_23 = arith.constant 0 : index
    %24 = vector.load %arg7[%c0_22, %c0_23] : memref<1x1xf32, #tpu.memory_space<vmem>>, vector<1x1xf32>
    %25 = vector.broadcast %24 : vector<1x1xf32> to vector<1x16xf32>
    %26 = arith.addf %23, %25 : vector<1x16xf32>
    %27 = arith.negf %26 : vector<1x16xf32>
    %28 = math.exp %27 : vector<1x16xf32>
    %cst_24 = arith.constant 1.000000e+00 : f32
    %29 = vector.broadcast %cst_24 : f32 to vector<1x16xf32>
    %30 = arith.addf %29, %28 : vector<1x16xf32>
    %31 = arith.divf %29, %30 : vector<1x16xf32>
    %c0_25 = arith.constant 0 : index
    %c0_26 = arith.constant 0 : index
    %32 = vector.load %arg8[%c0_25, %c0_26] : memref<1x16xf32, #tpu.memory_space<vmem>>, vector<1x16xf32>
    tpu.vector_store %arg8[%c0_25, %c0_26], %31 {strides = array<i32>} : memref<1x16xf32, #tpu.memory_space<vmem>>, vector<1x16xf32>,
    return
  }
  func.func @transform_0(%arg0: i32) -> (i32, i32) {
    %c0_i32 = arith.constant 0 : i32
    %c0_i32_0 = arith.constant 0 : i32
    return %arg0, %c0_i32 : i32, i32
  }
  func.func @transform_1(%arg0: i32) -> (i32, i32) {
    %c0_i32 = arith.constant 0 : i32
    %c0_i32_0 = arith.constant 0 : i32
    %c0_i32_1 = arith.constant 0 : i32
    return %c0_i32, %c0_i32_0 : i32, i32
  }
  func.func @transform_2(%arg0: i32) -> (i32, i32) {
    %c0_i32 = arith.constant 0 : i32
    %c0_i32_0 = arith.constant 0 : i32
    %c0_i32_1 = arith.constant 0 : i32
    return %c0_i32, %c0_i32_0 : i32, i32
  }
  func.func @transform_3(%arg0: i32) -> (i32, i32) {
    %c0_i32 = arith.constant 0 : i32
    %c0_i32_0 = arith.constant 0 : i32
    %c0_i32_1 = arith.constant 0 : i32
    return %c0_i32, %c0_i32_0 : i32, i32
  }
  func.func @transform_4(%arg0: i32) -> (i32, i32) {
    %c0_i32 = arith.constant 0 : i32
    %c0_i32_0 = arith.constant 0 : i32
    %c0_i32_1 = arith.constant 0 : i32
    return %c0_i32, %c0_i32_0 : i32, i32
  }
  func.func @transform_5(%arg0: i32) -> (i32, i32) {
    %c0_i32 = arith.constant 0 : i32
    %c0_i32_0 = arith.constant 0 : i32
    %c0_i32_1 = arith.constant 0 : i32
    return %c0_i32, %c0_i32_0 : i32, i32
  }
  func.func @transform_6(%arg0: i32) -> (i32, i32) {
    %c0_i32 = arith.constant 0 : i32
    %c0_i32_0 = arith.constant 0 : i32
    %c0_i32_1 = arith.constant 0 : i32
    return %c0_i32, %c0_i32_0 : i32, i32
  }
  func.func @transform_7(%arg0: i32) -> (i32, i32) {
    %c0_i32 = arith.constant 0 : i32
    %c0_i32_0 = arith.constant 0 : i32
    return %c0_i32, %arg0 : i32, i32
  }
}

</mosaic_0001>

<bundles_post_ra>
// kernel: tpu_custom_call.1
= control target key start
LH: loop header
LB: loop body
LE: loop exit
PB: predicated region body
PF: predicated region fallthrough
CT: control target
= control target key end

     0   :  { %s737_s0 = inlined_call_operand.hbm [shape: bf16[16,20], index: 0, kind: input, shape index: {}]   ;;  %s738_s1 = inlined_call_operand.hbm [shape: bf16[128,128], index: 1, kind: input, shape index: {}]   ;;  %s739_s2 = inlined_call_operand.vmem [shape: f32[1,128], index: 2, kind: input, shape index: {}]   ;;  %s740_s3 = inlined_call_operand.hbm [shape: bf16[128,128], index: 3, kind: input, shape index: {}]   ;;  %s741_s4 = inlined_call_operand.vmem [shape: f32[1,128], index: 4, kind: input, shape index: {}]   ;;  %s742_s5 = inlined_call_operand.vmem [shape: bf16[16,128], index: 5, kind: input, shape index: {}]   ;;  %s743_s6 = inlined_call_operand.<no memory space> [shape: f32[1,1], index: 6, kind: input, shape index: {}]   ;;  %s744_s7 = inlined_call_operand.hbm [shape: f32[1,16], index: 7, kind: output, shape index: {}]  }
   0x1   :  { %v12_v0 = vstv %s743_s6 }
   0x2   :  { %13 = vst [vmem:[#allocation3] sm:$0x1] %v12_v0 }
   0x3   :  { %14 = vsyncpa [#allocation5], 0 }
   0x4   :  { %15 = vsyncpa [#allocation8], 0 }
   0x5   :  { %16 = vsyncpa [#allocation6], 0  ;;  %s609_s26 = smov [#allocation7]   ;;  %s610_s28 = smov [#allocation4]  }
   0x6   :  { %s34_s27 = sshll.u32 %s609_s26, 4  ;;  %s22_s29 = sshll.u32 %s610_s28, 4  ;;  %s35_s27 = int_to_ptr.vmem [resolvable:$true] %s34_s27  ;;  %s661_s29 = int_to_ptr.vmem [resolvable:$true] %s22_s29 }
   0x7   :  { %s515_s9 = scalar_lea.hbm %s738_s1, 1024 }
   0x8   :  { %p516_p0 = scmp.ne.s32.totalorder %s738_s1, %s515_s9  ;;  %p519_p1 = scmp.lt.u32.totalorder %s515_s9, %s738_s1 }
   0xa   :  { %p521_p2 = pnand %p519_p1, %p516_p0 }
   0xc   :  { %524 = shalt.err (!%p521_p2)
}
   0xd   :  { %s525_s13 = scalar_lea.vmem %s35_s27, 1024  ;;  %p530_p4 = scmp.lt.s32.totalorder %s35_s27, %s35_s27 }
   0xe   :  { %p526_p3 = scmp.ne.s32.totalorder %s35_s27, %s525_s13  ;;  %p531_p5 = scmp.lt.s32.totalorder %s525_s13, %s525_s13 }
  0x10   :  { %p532_p6 = por %p531_p5, %p530_p4 }
  0x12   :  { %p533_p7 = pnand %p532_p6, %p526_p3 }
  0x14   :  { %536 = shalt.err (!%p533_p7)
}
  0x15   :  { %s611_s14 = smov 64   ;;  %s612_s15 = smov 4  }
  0x16   :  { %40 = dma.hbm_to_vmem [thread:$0]  %s738_s1, 1024, %s35_s27, [#allocation8], %s611_s14, %s611_s14, %s612_s15  }
  0x17   :  { %s537_s20 = scalar_lea.hbm %s737_s0, 128 }
  0x18   :  { %p538_p8 = scmp.ne.s32.totalorder %s737_s0, %s537_s20  ;;  %p541_p9 = scmp.lt.u32.totalorder %s537_s20, %s737_s0 }
  0x1a   :  { %p543_p10 = pnand %p541_p9, %p538_p8 }
  0x1c   :  { %546 = shalt.err (!%p543_p10)
}
  0x1d   :  { %s547_s25 = scalar_lea.vmem %s661_s29, 128  ;;  %p552_p12 = scmp.lt.s32.totalorder %s661_s29, %s661_s29 }
  0x1e   :  { %p548_p11 = scmp.ne.s32.totalorder %s661_s29, %s547_s25  ;;  %p553_p13 = scmp.lt.s32.totalorder %s547_s25, %s547_s25 }
  0x20   :  { %p554_p0 = por %p553_p13, %p552_p12 }
  0x22   :  { %p555_p1 = pnand %p554_p0, %p548_p11 }
  0x24   :  { %558 = shalt.err (!%p555_p1)
}
  0x25   :  { %28 = dma.hbm_to_vmem [thread:$0]  %s737_s0, 128, %s661_s29, [#allocation5], %s611_s14, %s611_s14, %s612_s15  }
  0x26   :  { %s613_s27 = smov [#allocation9]   ;;  %s559_s9 = scalar_lea.hbm %s740_s3, 1024 }
  0x27   :  { %s48_s28 = sshll.u32 %s613_s27, 4  ;;  %p560_p2 = scmp.ne.s32.totalorder %s740_s3, %s559_s9  ;;  %s49_s28 = int_to_ptr.vmem [resolvable:$true] %s48_s28 }
  0x28   :  { %p563_p3 = scmp.lt.u32.totalorder %s559_s9, %s740_s3 }
  0x2a   :  { %p565_p4 = pnand %p563_p3, %p560_p2 }
  0x2c   :  { %568 = shalt.err (!%p565_p4)
}
  0x2d   :  { %s569_s13 = scalar_lea.vmem %s49_s28, 1024  ;;  %p574_p6 = scmp.lt.s32.totalorder %s49_s28, %s49_s28 }
  0x2e   :  { %p570_p5 = scmp.ne.s32.totalorder %s49_s28, %s569_s13  ;;  %p575_p7 = scmp.lt.s32.totalorder %s569_s13, %s569_s13 }
  0x30   :  { %p576_p8 = por %p575_p7, %p574_p6 }
  0x32   :  { %p577_p9 = pnand %p576_p8, %p570_p5 }
  0x34   :  { %580 = shalt.err (!%p577_p9)
}
  0x35   :  { %54 = dma.hbm_to_vmem [thread:$0]  %s740_s3, 1024, %s49_s28, [#allocation8], %s611_s14, %s611_s14, %s612_s15  }
  0x36   :  { %603 = dma.done.wait [#allocation5], 128  }
  0x37   :  { %604 = vsyncadd [#allocation5], 4294967168 }
  0x38   :  { %605 = dma.done.wait [#allocation8], 2048  }
  0x39   :  { %606 = vsyncadd [#allocation8], 4294965248  ;;  %v614_v1 = vmov 0.0   ;;  %vm615_vm0 = vmmov 0   ;;  %v616_v2 = vmov 0   ;;  %v493_v3 = vld [vmem:[#allocation7] sm:$0xff]   ;;  %v367_v43 = vlaneseq }
  0x3a   :  { %437 = vmatprep.subr.bf16.mxu0 %v614_v1  ;;  %453 = vmatprep.mubr.msk.bf16.mxu0 %vm615_vm0, %v614_v1  ;;  %71 = vst [vmem:[#allocation2] sm:$0xff] %v616_v2  ;;  %v494_v4 = vld [vmem:[#allocation7 + $0x8] sm:$0xff]   ;;  %v495_v5 = vld [vmem:[#allocation7 + $0x10] sm:$0xff]   ;;  %vm80_vm1 = vcmask 162816   ;;  %v501_v6 = vld [vmem:[#allocation4] sm:$0xff]   ;;  %vm378_vm2 = vcmask 122880  }
  0x3b   :  { %457 = vmatprep.subr.bf16.mxu1 %v614_v1  ;;  %473 = vmatprep.mubr.msk.bf16.mxu1 %vm615_vm0, %v614_v1  ;;  %v502_v7 = vld [vmem:[#allocation9] sm:$0xff]   ;;  %v496_v8 = vld [vmem:[#allocation7 + $0x18] sm:$0xff]   ;;  %81 = vst.msk [vmem:[#allocation2] sm:$0xff] %vm80_vm1, %v501_v6  ;;  %v503_v9 = vld [vmem:[#allocation9 + $0x8] sm:$0xff]   ;;  %v368_v44 = vshrl.u32 %v367_v43, 7 }
  0x3c   :  { %492 = vset.pattern.permute.xlu0 %v616_v2  ;;  %438 = vmatpush3.bf16.msra.mxu0 %v493_v3  ;;  %v497_v10 = vld [vmem:[#allocation7 + $0x20] sm:$0xff]   ;;  %v504_v11 = vld [vmem:[#allocation9 + $0x10] sm:$0xff]   ;;  %v498_v12 = vld [vmem:[#allocation7 + $0x28] sm:$0xff]  }
  0x3d   :  { %439 = vmatprep.subr.bf16.mxu0 %v614_v1  ;;  %458 = vmatpush3.bf16.msra.mxu1 %v502_v7  ;;  %v505_v13 = vld [vmem:[#allocation9 + $0x18] sm:$0xff]   ;;  %v499_v14 = vld [vmem:[#allocation7 + $0x30] sm:$0xff]   ;;  %v506_v15 = vld [vmem:[#allocation9 + $0x20] sm:$0xff]   ;;  %v369_v45 = vsub.s32 0, %v368_v44 }
  0x3e   :  { %459 = vmatprep.subr.bf16.mxu1 %v614_v1  ;;  %v500_v16 = vld [vmem:[#allocation7 + $0x38] sm:$0xff]   ;;  %v507_v17 = vld [vmem:[#allocation9 + $0x28] sm:$0xff]   ;;  %v508_v19 = vld [vmem:[#allocation9 + $0x30] sm:$0xff]  }
  0x3f   :  { %v509_v20 = vld [vmem:[#allocation9 + $0x38] sm:$0xff]   ;;  %v397_v21 = vld [vmem:[%s739_s2] ss:$0 sm:$0xff]  ;;  %v361_v31 = vld [vmem:[#allocation3] sm:$0x1] }
  0x40   :  { %440 = vmatpush3.bf16.msra.mxu0 %v494_v4  ;;  %364 = vperm.xlu0 %492, %v361_v31   ;;  %v406_v32 = vld [vmem:[%s741_s4] ss:$0 sm:$0xff]  ;;  %s617_s4 = smov [#allocation10]  }
  0x41   :  { %441 = vmatprep.subr.bf16.mxu0 %v614_v1  ;;  %460 = vmatpush3.bf16.msra.mxu1 %v503_v9  ;;  %v510_v42 = vld [vmem:[%s742_s5] sm:$0xff]   ;;  %s386_s18 = sshll.u32 %s617_s4, 4  ;;  %s387_s18 = int_to_ptr.vmem [resolvable:$true] %s386_s18 }
  0x42   :  { %461 = vmatprep.subr.bf16.mxu1 %v614_v1  ;;  %v82_v18 = vld [vmem:[#allocation2] sm:$0xff]  ;;  %s581_s5 = scalar_lea.vmem %s387_s18, 16  ;;  %s585_s19 = scalar_lea.vmem %s387_s18, 32 }
  0x43   :  { %p582_p10 = scmp.ne.s32.totalorder %s387_s18, %s581_s5  ;;  %p586_p11 = scmp.lt.s32.totalorder %s387_s18, %s387_s18 }
  0x44   :  { %442 = vmatpush3.bf16.msra.mxu0 %v495_v5  ;;  %p587_p12 = scmp.lt.s32.totalorder %s585_s19, %s581_s5 }
  0x45   :  { %443 = vmatprep.subr.bf16.mxu0 %v614_v1  ;;  %462 = vmatpush3.bf16.msra.mxu1 %v504_v11 }
  0x46   :  { %463 = vmatprep.subr.bf16.mxu1 %v614_v1  ;;  %p588_p13 = por %p587_p12, %p586_p11 }
  0x48   :  { %444 = vmatpush3.bf16.msra.mxu0 %v496_v8  ;;  %p589_p0 = pnand %p588_p13, %p582_p10 }
  0x49   :  { %445 = vmatprep.subr.bf16.mxu0 %v614_v1  ;;  %464 = vmatpush3.bf16.msra.mxu1 %v505_v13 }
  0x4a   :  { %465 = vmatprep.subr.bf16.mxu1 %v614_v1 }
  0x4c   :  { %446 = vmatpush3.bf16.msra.mxu0 %v497_v10 }
  0x4d   :  { %447 = vmatprep.subr.bf16.mxu0 %v614_v1  ;;  %466 = vmatpush3.bf16.msra.mxu1 %v506_v15 }
  0x4e   :  { %467 = vmatprep.subr.bf16.mxu1 %v614_v1 }
  0x50   :  { %448 = vmatpush3.bf16.msra.mxu0 %v498_v12 }
  0x51   :  { %449 = vmatprep.subr.bf16.mxu0 %v614_v1  ;;  %468 = vmatpush3.bf16.msra.mxu1 %v507_v17 }
  0x52   :  { %469 = vmatprep.subr.bf16.mxu1 %v614_v1 }
  0x54   :  { %450 = vmatpush3.bf16.msra.mxu0 %v499_v14 }
  0x55   :  { %451 = vmatprep.subr.bf16.mxu0 %v614_v1  ;;  %470 = vmatpush3.bf16.msra.mxu1 %v508_v19 }
  0x56   :  { %471 = vmatprep.subr.bf16.mxu1 %v614_v1 }
  0x58   :  { %452 = vmatpush3.bf16.msra.mxu0 %v500_v16 }
  0x59   :  { %477 = vmatprep.subr.bf16.mxu0 %v614_v1  ;;  %472 = vmatpush3.bf16.msra.mxu1 %v509_v20 }
  0x5b   :  { %454 = vmatmul.mubr.bf16.vlgmr.msra.gmra.mrb[0].mxu0 %v82_v18 }
  0x5c   :  { %479 = vmatprep.mubr.msk.bf16.mxu0 %vm615_vm0, %v614_v1 }
  0xbf   :  { %v365_v46 = vpop.permute.xlu0 %364 }
  0xc0   :  { %v370_v47 = vrot.slane %v365_v46, %v369_v45 }
 0x12e   :  { %v188_v22 = vpop.f32.mrb[0].mxu0 }
 0x12f   :  { %v189_v23 = vadd.f32 %v397_v21, %v188_v22  ;;  %v455_v24 = vpop.f32.mrb[1].mxu0 }
 0x130   :  { %v191_v25 = vpop.f32.mrb[2].mxu0 }
 0x131   :  { %v192_v26 = vadd.f32 %v397_v21, %v191_v25  ;;  %v456_v27 = vpop.f32.mrb[3].mxu0  ;;  %v195_v28 = vmax.f32 %v189_v23, 0.0 }
 0x133   :  { %v196_v29 = vmax.f32 %v192_v26, 0.0 }
 0x135   :  { %v197_v30 = vpack.c.bf16 %v196_v29, %v195_v28 }
 0x137   :  { %474 = vmatmul.mubr.bf16.vlgmr.msra.gmra.mrb[0].mxu1 %v197_v30 }
 0x20a   :  { %v303_v33 = vpop.f32.mrb[0].mxu1 }
 0x20b   :  { %v304_v34 = vadd.f32 %v406_v32, %v303_v33  ;;  %v475_v35 = vpop.f32.mrb[1].mxu1 }
 0x20c   :  { %v306_v36 = vpop.f32.mrb[2].mxu1 }
 0x20d   :  { %v307_v37 = vadd.f32 %v406_v32, %v306_v36  ;;  %v476_v38 = vpop.f32.mrb[3].mxu1  ;;  %v310_v39 = vmax.f32 %v304_v34, 0.0 }
 0x20f   :  { %v311_v40 = vmax.f32 %v307_v37, 0.0 }
 0x211   :  { %v314_v41 = vpack.c.bf16 %v311_v40, %v310_v39 }
 0x213   :  { %478 = vmatpush3.bf16.xpose.msra.mxu0 %v314_v41 }
 0x21a   :  { %480 = vmatmul.mubr.bf16.vlgmr.msra.gmra.mrb[4].mxu0 %v510_v42 }
 0x2ed   :  { %v355_v48 = vpop.f32.mrb[4].mxu0 }
 0x2ee   :  { %v371_v49 = vadd.f32 %v370_v47, %v355_v48  ;;  %v481_v50 = vpop.f32.mrb[5].mxu0 }
 0x2ef   :  { %v358_v51 = vpop.f32.mrb[6].mxu0 }
 0x2f0   :  { %v416_v52 = vmul.f32 -1.442695, %v371_v49  ;;  %v482_v53 = vpop.f32.mrb[7].mxu0 }
 0x2f2   :  { %511 = vpow2.f32 %v416_v52 }
 0x2fc   :  { %v512_v54 = vpop.eup %511 }
 0x2fd   :  { %v375_v55 = vadd.f32 1.0, %v512_v54 }
 0x2ff   :  { %513 = vrcp.f32 %v375_v55 }
 0x309   :  { %v514_v56 = vpop.eup %513 }
 0x30a   :  { %379 = vst.msk [vmem:[#allocation10] sm:$0x1] %vm378_vm2, %v514_v56 }
 0x30b   :  { %592 = shalt.err (!%p589_p0)
}
 0x30c   :  { %s593_s22 = scalar_lea.hbm %s744_s7, 16 }
 0x30d   :  { %p594_p1 = scmp.ne.s32.totalorder %s744_s7, %s593_s22  ;;  %p597_p2 = scmp.lt.u32.totalorder %s593_s22, %s744_s7 }
 0x30f   :  { %p599_p3 = pnand %p597_p2, %p594_p1 }
 0x311   :  { %602 = shalt.err (!%p599_p3)
}
 0x312   :  { %389 = dma.vmem_to_hbm [thread:$0]  %s387_s18, 16, %s744_s7, [#allocation6]  }
 0x313   :  { %607 = dma.done.wait [#allocation6], 16  }
 0x314   :  { %608 = vsyncadd [#allocation6], 4294967280 }
 0x315   :  { %393 = vsyncpa [#allocation5], 1 }
 0x316   :  { %394 = vsyncpa [#allocation8], 1 }
 0x317   :  { %395 = vsyncpa [#allocation6], 1 }

</bundles_post_ra>
